<compile_context>
chip_gen: v5e
topology: v5e:2x2
jax: 0.10.0
libtpu: 0.0.40
codegen_flags: <defaults>
</compile_context>

<pallas_src>
import jax
import jax.numpy as jnp
from jax.experimental import pallas as pl
from jax.experimental.pallas import tpu as pltpu


def _shuffle_conv_kernel(x_ref, w_ref, proj_ref, rest_ref):
    # x_ref:    (C_in, TL)    one batch element, one spatial tile (lanes = spatial)
    # w_ref:    (C_out, C_in) full 1x1-conv weight
    # proj_ref: (mid, TL)     first half of the output channels
    # rest_ref: (C_out-mid, TL) second half of the output channels
    mid = proj_ref.shape[0]
    y = jnp.dot(w_ref[...], x_ref[...], preferred_element_type=jnp.float32)
    proj_ref[...] = y[:mid, :].astype(proj_ref.dtype)
    rest_ref[...] = y[mid:, :].astype(rest_ref.dtype)


def _pick_lane_tile(hw, n_batch, target=1024):
    """Lane (spatial) tile: multiple of 128, <= target, keep some grid depth."""
    hw128 = -(-hw // 128) * 128
    tl = max(128, (min(target, hw128) // 128) * 128)
    # Prefer >= 8 grid steps (pipelining depth / v7x 2-TC sharding) when possible.
    while tl > 128 and n_batch * (-(-hw128 // tl)) < 8:
        tl = max(128, ((tl // 2) // 128) * 128)
    return tl


def shuffle_channels_conv_pallas(x, weight, mid_channel, *, lane_tile_target=1024):
    """x: (N, C, H, W) NCHW; weight: (C_out, C_in, 1, 1). Returns (proj, rest) in NCHW."""
    N, C, H, W = x.shape
    C_out, C_in = weight.shape[0], weight.shape[1]
    assert C == C_in
    mid = int(mid_channel)
    rest = C_out - mid

    hw = H * W
    x3 = x.reshape(N, C, hw)        # free: no data movement
    w2d = weight[:, :, 0, 0]        # (C_out, C_in)

    tl = _pick_lane_tile(hw, N, lane_tile_target)
    n_tiles = -(-hw // tl)
    hw_pad = n_tiles * tl
    if hw_pad != hw:
        x3 = jnp.pad(x3, ((0, 0), (0, 0), (0, hw_pad - hw)))

    proj, rest_v = pl.pallas_call(
        _shuffle_conv_kernel,
        out_shape=(
            jax.ShapeDtypeStruct((N, mid, hw_pad), x.dtype),
            jax.ShapeDtypeStruct((N, rest, hw_pad), x.dtype),
        ),
        grid_spec=pltpu.PrefetchScalarGridSpec(
            num_scalar_prefetch=0,
            grid=(N, n_tiles),
            in_specs=[
                pl.BlockSpec((pl.Squeezed(), C_in, tl), lambda n, j: (n, 0, j)),
                pl.BlockSpec((C_out, C_in), lambda n, j: (0, 0)),
            ],
            out_specs=(
                pl.BlockSpec((pl.Squeezed(), mid, tl), lambda n, j: (n, 0, j)),
                pl.BlockSpec((pl.Squeezed(), rest, tl), lambda n, j: (n, 0, j)),
            ),
        ),
        compiler_params=pltpu.CompilerParams(
            dimension_semantics=("parallel", "parallel"),
        ),
    )(x3, w2d)

    if hw_pad != hw:
        proj = proj[:, :, :hw]
        rest_v = rest_v[:, :, :hw]
    return proj.reshape(N, mid, H, W), rest_v.reshape(N, rest, H, W)


class ShuffleChannelsConvPallas:
    """JAX/Pallas equivalent of the PyTorch ShuffleChannelsConv module."""

    def __init__(self, mid_channel, groups=2, *, key=None, dtype=jnp.float32):
        assert groups == 2
        self.groups = groups
        self.mid_channel = int(mid_channel)
        self.channels = int(mid_channel * 2)
        if key is None:
            key = jax.random.PRNGKey(0)
        # Conv2d weight shape: (C_out, C_in, 1, 1); kaiming-uniform-ish bound.
        fan_in = self.channels
        bound = 1.0 / jnp.sqrt(fan_in)
        self.weight = jax.random.uniform(
            key, (self.channels, self.channels, 1, 1),
            minval=-bound, maxval=bound, dtype=dtype,
        )

    def __call__(self, x):
        # x: (N, C, H, W) -- NCHW, same as PyTorch.
        N, C, H, W = x.shape
        assert C == self.channels
        return shuffle_channels_conv_pallas(x, self.weight, self.mid_channel)


if __name__ == "__main__":
    key = jax.random.PRNGKey(0)
    k_w, k_x = jax.random.split(key)

    mid_channel = 2            # -> channels = 4
    N, H, W = 2, 16, 16
    C = mid_channel * 2

    module = ShuffleChannelsConvPallas(mid_channel, groups=2, key=k_w)
    x = jax.random.normal(k_x, (N, C, H, W), dtype=jnp.float32)

    data_project, data_x = module(x)
    jax.block_until_ready(data_project)
    jax.block_until_ready(data_x)

    # Sanity-check against a pure-JAX reference of the same math.
    w2d = module.weight[:, :, 0, 0]                     # (C_out, C_in)
    y_ref = jnp.einsum("oc,nchw->nohw", w2d, x)
    ref_project = y_ref[:, :mid_channel]
    ref_x = y_ref[:, mid_channel:]
    assert data_project.shape == (N, mid_channel, H, W)
    assert data_x.shape == (N, C - mid_channel, H, W)
    assert jnp.allclose(data_project, ref_project, atol=1e-5, rtol=1e-5)
    assert jnp.allclose(data_x, ref_x, atol=1e-5, rtol=1e-5)

    print("KERNEL_OK")
</pallas_src>

<mosaic_0001>
module attributes {stable_mosaic.version = 11 : i64} {
  func.func @_shuffle_conv_kernel(%arg0: i32, %arg1: i32, %arg2: memref<1x4x128xf32, #tpu.memory_space<vmem>>, %arg3: memref<4x4xf32, #tpu.memory_space<vmem>>, %arg4: memref<1x2x128xf32, #tpu.memory_space<vmem>>, %arg5: memref<1x2x128xf32, #tpu.memory_space<vmem>>) attributes {dimension_semantics = [#tpu.dimension_semantics<parallel>, #tpu.dimension_semantics<parallel>], iteration_bounds = array<i64: 2, 2>, scalar_prefetch = 0 : i64, scratch_operands = 0 : i64, tpu.core_type = #tpu.core_type<tc>, window_params = [{transform_indices = @transform_0, window_bounds = array<i64: 1, 4, 128>}, {pipeline_mode = #tpu.pipeline_mode<synchronous>, transform_indices = @transform_1, window_bounds = array<i64: 4, 4>}, {transform_indices = @transform_2, window_bounds = array<i64: 1, 2, 128>}, {transform_indices = @transform_3, window_bounds = array<i64: 1, 2, 128>}]} {
    %c0 = arith.constant 0 : index
    %c0_0 = arith.constant 0 : index
    %0 = vector.load %arg3[%c0, %c0_0] : memref<4x4xf32, #tpu.memory_space<vmem>>, vector<4x4xf32>
    %c0_1 = arith.constant 0 : index
    %c0_2 = arith.constant 0 : index
    %c0_3 = arith.constant 0 : index
    %1 = vector.load %arg2[%c0_1, %c0_2, %c0_3] : memref<1x4x128xf32, #tpu.memory_space<vmem>>, vector<1x4x128xf32>
    %2 = vector.shape_cast %1 : vector<1x4x128xf32> to vector<4x128xf32>
    %cst = arith.constant dense<0.000000e+00> : vector<4x128xf32>
    %3 = tpu.matmul %0, %2, %cst {dimension_numbers = #tpu.dot_dimension_numbers<[1], [0], [0], [1], [0, 0, 1, 1], [], []>} : vector<4x4xf32>, vector<4x128xf32>, vector<4x128xf32> -> vector<4x128xf32>
    %4 = vector.extract_strided_slice %3 {offsets = [0, 0], sizes = [2, 128], strides = [1, 1]} : vector<4x128xf32> to vector<2x128xf32>
    %c0_4 = arith.constant 0 : index
    %c0_5 = arith.constant 0 : index
    %c0_6 = arith.constant 0 : index
    %5 = vector.load %arg4[%c0_4, %c0_5, %c0_6] : memref<1x2x128xf32, #tpu.memory_space<vmem>>, vector<1x2x128xf32>
    %6 = vector.shape_cast %5 : vector<1x2x128xf32> to vector<2x128xf32>
    %7 = vector.shape_cast %4 : vector<2x128xf32> to vector<1x2x128xf32>
    tpu.vector_store %arg4[%c0_4, %c0_5, %c0_6], %7 {strides = array<i32>} : memref<1x2x128xf32, #tpu.memory_space<vmem>>, vector<1x2x128xf32>,
    %8 = vector.extract_strided_slice %3 {offsets = [2, 0], sizes = [2, 128], strides = [1, 1]} : vector<4x128xf32> to vector<2x128xf32>
    %c0_7 = arith.constant 0 : index
    %c0_8 = arith.constant 0 : index
    %c0_9 = arith.constant 0 : index
    %9 = vector.load %arg5[%c0_7, %c0_8, %c0_9] : memref<1x2x128xf32, #tpu.memory_space<vmem>>, vector<1x2x128xf32>
    %10 = vector.shape_cast %9 : vector<1x2x128xf32> to vector<2x128xf32>
    %11 = vector.shape_cast %8 : vector<2x128xf32> to vector<1x2x128xf32>
    tpu.vector_store %arg5[%c0_7, %c0_8, %c0_9], %11 {strides = array<i32>} : memref<1x2x128xf32, #tpu.memory_space<vmem>>, vector<1x2x128xf32>,
    return
  }
  func.func @transform_0(%arg0: i32, %arg1: i32) -> (i32, i32, i32) {
    %c0_i32 = arith.constant 0 : i32
    %c0_i32_0 = arith.constant 0 : i32
    return %arg0, %c0_i32, %arg1 : i32, i32, i32
  }
  func.func @transform_1(%arg0: i32, %arg1: i32) -> (i32, i32) {
    %c0_i32 = arith.constant 0 : i32
    %c0_i32_0 = arith.constant 0 : i32
    %c0_i32_1 = arith.constant 0 : i32
    return %c0_i32, %c0_i32_0 : i32, i32
  }
  func.func @transform_2(%arg0: i32, %arg1: i32) -> (i32, i32, i32) {
    %c0_i32 = arith.constant 0 : i32
    %c0_i32_0 = arith.constant 0 : i32
    return %arg0, %c0_i32, %arg1 : i32, i32, i32
  }
  func.func @transform_3(%arg0: i32, %arg1: i32) -> (i32, i32, i32) {
    %c0_i32 = arith.constant 0 : i32
    %c0_i32_0 = arith.constant 0 : i32
    return %arg0, %c0_i32, %arg1 : i32, i32, i32
  }
}

</mosaic_0001>

<bundles_post_ra>
// kernel: tpu_custom_call.1
= control target key start
LH: loop header
LB: loop body
LE: loop exit
PB: predicated region body
PF: predicated region fallthrough
CT: control target
= control target key end

     0   :  { %s964_s0 = inlined_call_operand.hbm [shape: f32[2,4,256], index: 0, kind: input, shape index: {}]   ;;  %s965_s1 = inlined_call_operand.hbm [shape: f32[4,4], index: 1, kind: input, shape index: {}]   ;;  %s966_s2 = inlined_call_operand.hbm [shape: f32[2,2,256], index: 2, kind: output, shape index: {0}]   ;;  %s967_s3 = inlined_call_operand.hbm [shape: f32[2,2,256], index: 3, kind: output, shape index: {1}]  }
   0x1   :  { %974 = sst [smem:[#allocation19_spill]] %s965_s1 }
   0x2   :  { %9 = vsyncpa [#allocation3], 0 }
   0x3   :  { %11 = vsyncpa [#allocation3 + $0x1], 0 }
   0x4   :  { %12 = vsyncpa [#allocation6], 0 }
   0x5   :  { %13 = vsyncpa [#allocation4], 0 }
   0x6   :  { %15 = vsyncpa [#allocation4 + $0x1], 0 }
   0x7   :  { %16 = vsyncpa [#allocation9], 0 }
   0x8   :  { %18 = vsyncpa [#allocation9 + $0x1], 0  ;;  %s769_s12 = smov 0   ;;  %s771_s13 = smov 0  }
   0x9   :  { %s773_s14 = smov 0   ;;  %s775_s15 = smov 0  }
   0xa   :  { %s777_s16 = smov 0   ;;  %s779_s17 = smov 0  }
   0xb   :  { %s781_s18 = smov 0   ;;  %s783_s19 = smov 0  }
   0xc LB: > { %975 = sst [smem:[#allocation14_spill]] %s718_s12  ;;  %s435_s20 = sadd.s32 4294967295, %s746_s19   ;;  %s746_s19 = sphi %s783_s19, %s24_s19   ;;  %s742_s18 = sphi %s781_s18, %s999_s18   ;;  %s738_s17 = sphi %s779_s17, %s998_s17   ;;  %s734_s16 = sphi %s777_s16, %s997_s16   ;;  %s730_s15 = sphi %s775_s15, %s996_s15   ;;  %s726_s14 = sphi %s773_s14, %s995_s14   ;;  %s722_s13 = sphi %s771_s13, %s994_s13   ;;  %s718_s12 = sphi %s769_s12, %s993_s12  }
   0xd   : > { %s436_s21 = sadd.s32 4294967294, %s746_s19   ;;  %p58_p0 = scmp.ne.s32.totalorder %s722_s13, %s718_s12 }
   0xe   : > { %p813_p1 = scmp.eq.s32.totalorder %s435_s20, 0  ;;  %p817_p2 = scmp.eq.s32.totalorder %s435_s20, 3 }
   0xf   : > { %p111_p3 = scmp.eq.s32.totalorder %s436_s21, 3  ;;  %p437_p5 = scmp.ge.s32.totalorder %s746_s19, 1 }
  0x10   : > { %p823_p4 = por %p813_p1, %p58_p0  ;;  %p146_p7 = scmp.lt.s32.totalorder %s746_s19, 5 }
  0x11   : > { %p828_p6 = por %p111_p3, %p58_p0  ;;  %s981_s1 = sld [smem:[#allocation19_spill]] }
  0x12   : > { %p836_p8 = pnand %p437_p5, %p146_p7  ;;  %s748_s30 = smov [#allocation5]  }
  0x13   : > { %s979_s25 = scalar_select %p828_p6, 1, 0 }
  0x14   : > { %p468_p9 = pneg %p836_p8  ;;  %s160_s4 = sshll.u32 %s748_s30, 4  ;;  %s161_s4 = int_to_ptr.vmem [resolvable:$true] %s160_s4 }
  0x15   : > { %980 = sst [smem:[#allocation15_spill]] %s979_s25  ;;  %s33_s5 = sadd.s32 1, %s738_s17 }
  0x16   : > { %p469_p10 = pnand %p468_p9, %p813_p1  ;;  %p34_p11 = scmp.ge.s32.totalorder %s33_s5, 2 }
  0x17   : > { %s158_s28 = sshll.u32 %s981_s1, 4  ;;  %s36_s6 = sadd.s32 1, %s742_s18  ;;  %s159_s28 = int_to_ptr.hbm [resolvable:$true] %s158_s28 }
  0x18   : > { %471 = dma.hbm_to_vmem [thread:$0]  (!%p469_p10), %s159_s28, 64, %s161_s4, [#allocation6]  }
  0x19   : > { %s45_s7 = sadd.s32 1, %s726_s14  ;;  %p52_p12 = scmp.ne.s32.totalorder %s726_s14, %s722_s13 }
  0x1a   : > { %s1001_s5 = smov (%p34_p11, %s33_s5), 0  ;;  %s1003_s6 = smov (!%p34_p11, %s36_s6), %s742_s18 }
  0x1b   : > { %983 = sst [smem:[#allocation16_spill]] %s1001_s5  ;;  %s41_s8 = ssub.s32 %s738_s17, %s1001_s5 }
  0x1c   : > { %p53_p13 = scmp.eq.s32.totalorder %s746_s19, 0  ;;  %p38_p0 = scmp.ge.s32.totalorder %s1003_s6, 2 }
  0x1d   : > { %p857_p3 = por %p817_p2, %p52_p12  ;;  %p484_p7 = scmp.lt.s32.totalorder %s746_s19, 4 }
  0x1e   : > { %p861_p5 = por %p53_p13, %p52_p12  ;;  %s1005_s6 = smov (%p38_p0, %s1003_s6), 0 }
  0x1f   : > { %s984_s9 = scalar_select %p857_p3, 1, 0 }
  0x20   : > { %987 = sst [smem:[#allocation18_spill]] %s1005_s6  ;;  %s171_s11 = sand.u32 1, %s726_s14  }
  0x21   : > { %985 = sst [smem:[#allocation17_spill]] %s984_s9  ;;  %s441_s20 = sshll.u32 %s742_s18, 1 }
  0x22   : > { %s40_s21 = ssub.s32 %s742_s18, %s1005_s6  ;;  %s440_s27 = sshll.u32 %s171_s11, 2 }
  0x23   : > { %s42_s26 = sor.u32 %s41_s8, %s40_s21  ;;  %s179_s23 = sadd.s32 %s738_s17, %s441_s20 }
  0x24   : > { %p43_p9 = scmp.eq.s32.totalorder %s42_s26, 0  ;;  %s175_s28 = scalar_lea.vmem [#allocation2], %s440_s27 }
  0x25   : > { %s185_s30 = sshll.u32 %s175_s28, 4  ;;  %s442_s1 = sshll.u32 %s179_s23, 2  ;;  %s186_s30 = int_to_ptr.vmem [resolvable:$true] %s185_s30 }
  0x26   : > { %s874_s4 = scalar_select %p43_p9, %s726_s14, %s45_s7  }
  0x27   : > { %s181_s12 = scalar_lea.hbm %s964_s0, %s442_s1  ;;  %p473_p2 = pnand %p484_p7, %p861_p5 }
  0x28   : > { %s183_s9 = sshll.u32 %s181_s12, 4  ;;  %s172_s6 = scalar_lea.sflag [#allocation3], %s171_s11  ;;  %s184_s9 = int_to_ptr.hbm [resolvable:$true] %s183_s9 }
  0x29   : > { %475 = dma.hbm_to_vmem [thread:$0]  (!%p473_p2), %s184_s9, 64, %s186_s30, %s172_s6  }
  0x2a   : > { %194 = sbr.rel (%p836_p8) target bundleno = 194 (0xc2), region = 28  ;;  %s886_s7 = sand.u32 (!%p836_p8), 1, %s722_s13  }
  0x2b   : > { %s444_s8 = sshll.u32 (!%p836_p8), %s886_s7, 2  ;;  %s197_s20 = scalar_lea.sflag (!%p836_p8), [#allocation3], %s886_s7 }
  0x2c   : > { %s200_s25 = scalar_lea.vmem (!%p836_p8), [#allocation2], %s444_s8 }
  0x2f   : > { %701 = dma.done.wait (%p823_p4), %s197_s20, 64  }
  0x30   : > { %703 = vsyncadd (%p823_p4), %s197_s20, 4294967232 }
  0x31   : > { %705 = dma.done.wait (%p813_p1), [#allocation6], 64  }
  0x32   : > { %707 = vsyncadd (%p813_p1), [#allocation6], 4294967232  ;;  %vm240_vm0 = vcmask 1043456   ;;  %vm236_vm1 = vcmask 31744   ;;  %v235_v0 = vld [vmem:[%s200_s25] sm:$0xf] }
  0x33   : > { %v234_v1 = vld [vmem:[#allocation5] sm:$0xf]  ;;  %448 = vmatpush.msk.msra.mxu0 %vm240_vm0, %v235_v0  ;;  %s452_s1 = sshll.u32 %s734_s16, 1  ;;  %s446_s29 = sshll.u32 %s886_s7, 1 }
  0x34   : > { %449 = vmatmul.msk.f32.vlgmr.msra.gmra.mxu0 %vm236_vm1, %v234_v1  ;;  %s282_s12 = sadd.s32 %s730_s15, %s452_s1  ;;  %s226_s21 = scalar_lea.vmem [#allocation7], %s446_s29 }
  0x35   : > { %s453_s24 = sshll.u32 %s282_s12, 1  ;;  %s286_s26 = sshll.u32 %s226_s21, 4  ;;  %s287_s26 = int_to_ptr.vmem [resolvable:$true] %s286_s26 }
  0x36   : > { %s284_s9 = scalar_lea.hbm %s966_s2, %s453_s24  ;;  %s300_s11 = scalar_lea.hbm %s967_s3, %s453_s24 }
  0x37   : > { %s233_s27 = scalar_lea.vmem [#allocation8], %s446_s29  ;;  %s288_s30 = sshll.u32 %s284_s9, 4  ;;  %s289_s30 = int_to_ptr.hbm [resolvable:$true] %s288_s30 }
  0x38   : > { %s302_s28 = sshll.u32 %s233_s27, 4  ;;  %s304_s8 = sshll.u32 %s300_s11, 4  ;;  %s907_s28 = int_to_ptr.vmem [resolvable:$true] %s302_s28  ;;  %s909_s8 = int_to_ptr.hbm [resolvable:$true] %s304_s8 }
  0x39   : > { %s267_s15 = scalar_lea.sflag [#allocation4], %s886_s7  ;;  %s626_s16 = sshra.s32 %s289_s30, 4  ;;  %s627_s16 = int_to_ptr.hbm [resolvable:$true] %s626_s16 }
  0x3a   : > { %s628_s20 = scalar_lea.hbm %s627_s16, 2  ;;  %s632_s12 = scalar_lea.hbm %s966_s2, 8 }
  0x3b   : > { %p629_p1 = scmp.ne.s32.totalorder %s627_s16, %s628_s20  ;;  %p633_p10 = scmp.lt.s32.totalorder %s627_s16, %s966_s2 }
  0x3c   : > { %p634_p11 = scmp.lt.s32.totalorder %s632_s12, %s628_s20 }
  0x3d   : > { %p630_p4 = pnand %p629_p1, %p857_p3 }
  0x3e   : > { %p635_p12 = por %p634_p11, %p633_p10 }
  0x3f   : > { %p631_p8 = pneg %p630_p4 }
  0x41   : > { %p636_p13 = pnand %p635_p12, %p631_p8 }
  0xb1   : > { %v261_v2 = vpop.f32.mrf.mxu0 }
  0xb2   : > { %264 = vst [vmem:[%s226_s21] sm:$0x3] %v261_v2 }
  0xb3   : > { %265 = vst [vmem:[%s233_s27 - $0x2] sm:$0xc] %v261_v2 }
  0xb4   : > { %639 = shalt.err (!%p636_p13)
}
  0xb5   : > { %464 = dma.vmem_to_hbm [thread:$0]  (%p857_p3), %s287_s26, 32, %s289_s30, %s267_s15  }
  0xb6   : > { %s272_s5 = scalar_lea.sflag [#allocation9], %s886_s7  ;;  %s654_s6 = sshra.s32 %s909_s8, 4  ;;  %s655_s6 = int_to_ptr.hbm [resolvable:$true] %s654_s6 }
  0xb7   : > { %s656_s9 = scalar_lea.hbm %s655_s6, 2  ;;  %s660_s11 = scalar_lea.hbm %s967_s3, 8 }
  0xb8   : > { %p657_p0 = scmp.ne.s32.totalorder %s655_s6, %s656_s9  ;;  %p661_p9 = scmp.lt.s32.totalorder %s655_s6, %s967_s3 }
  0xb9   : > { %p662_p2 = scmp.lt.s32.totalorder %s660_s11, %s656_s9 }
  0xba   : > { %p658_p5 = pnand %p657_p0, %p857_p3 }
  0xbb   : > { %p663_p1 = por %p662_p2, %p661_p9 }
  0xbc   : > { %p659_p7 = pneg %p658_p5 }
  0xbe   : > { %p664_p4 = pnand %p663_p1, %p659_p7 }
  0xc0   : > { %667 = shalt.err (!%p664_p4)
}
  0xc1   : > { %465 = dma.vmem_to_hbm [thread:$0]  (%p857_p3), %s907_s28, 32, %s909_s8, %s272_s5  }
  0xc2 PF: > { %s989_s7 = sld [smem:[#allocation14_spill]]  ;;  %p486_p8 = scmp.ge.s32.totalorder %s746_s19, 2 }
  0xc4   : > { %p477_p10 = pnand %p486_p8, %p828_p6 }
  0xc6   : > { %p478_p11 = pneg %p477_p10 }
  0xc8   : > { %s316_s30 = sand.u32 1, %s989_s7  }
  0xc9   : > { %s317_s15 = scalar_lea.sflag [#allocation4], %s316_s30 }
  0xca   : > { %709 = dma.done.wait (%p478_p11), %s317_s15, 32  }
  0xcb   : > { %711 = vsyncadd (%p478_p11), %s317_s15, 4294967264  ;;  %s327_s16 = scalar_lea.sflag [#allocation9], %s316_s30 }
  0xcc   : > { %713 = dma.done.wait (%p478_p11), %s327_s16, 32  }
  0xcd   : > { %715 = vsyncadd (%p478_p11), %s327_s16, 4294967264  ;;  %s24_s19 = sadd.s32 1, %s746_s19   ;;  %s991_s23 = sld [smem:[#allocation16_spill]] }
  0xce   : > { %p21_p12 = scmp.ge.s32.totalorder %s24_s19, 6   ;;  %s992_s28 = sld [smem:[#allocation18_spill]] }
  0xcf   : > { %s993_s12 = smov %s722_s13  ;;  %s994_s13 = smov %s726_s14 }
  0xd0   : > { %s995_s14 = smov %s874_s4  ;;  %s996_s15 = smov %s738_s17 }
  0xd1   : > { %s997_s16 = smov %s742_s18  ;;  %23 = sbr.rel (!%p21_p12) target bundleno = 12 (0xc), region = 94 }
  0xd3   : > { %s998_s17 = smov %s991_s23 }
  0xd4   : > { %s999_s18 = smov %s992_s28 }
  0xd6   :  { %333 = vsyncpa [#allocation3], 1 }
  0xd7   :  { %335 = vsyncpa [#allocation3 + $0x1], 1 }
  0xd8   :  { %336 = vsyncpa [#allocation6], 1 }
  0xd9   :  { %337 = vsyncpa [#allocation4], 1 }
  0xda   :  { %339 = vsyncpa [#allocation4 + $0x1], 1 }
  0xdb   :  { %340 = vsyncpa [#allocation9], 1 }
  0xdc   :  { %342 = vsyncpa [#allocation9 + $0x1], 1 }

</bundles_post_ra>
